<compile_context>
chip_gen: v7x
topology: tpu7x:2x2x1
jax: 0.10.0
libtpu: 0.0.40
codegen_flags: <defaults>
</compile_context>

<pallas_src>
import jax
import jax.numpy as jnp
from jax import lax
from jax.experimental import pallas as pl
from jax.experimental.pallas import tpu as pltpu


def _round_up(x, m):
    return -(-x // m) * m


def _pick_divisor(total, candidates, default):
    for c in candidates:
        if c <= total and total % c == 0:
            return c
    return default


# --------------------------------------------------------------------------
# Stage 1: input projection  gates_dir = x @ W_ih_dir + b_dir   (both dirs)
# --------------------------------------------------------------------------
def _gate_proj_kernel(x_ref, wf_ref, wb_ref, bf_ref, bb_ref,
                      gf_ref, gb_ref, accf_ref, accb_ref):
    k = pl.program_id(1)
    nk = pl.num_programs(1)

    @pl.when(k == 0)
    def _():
        accf_ref[...] = jnp.zeros_like(accf_ref)
        accb_ref[...] = jnp.zeros_like(accb_ref)

    x = x_ref[...]
    accf_ref[...] += jnp.dot(x, wf_ref[...], preferred_element_type=jnp.float32)
    accb_ref[...] += jnp.dot(x, wb_ref[...], preferred_element_type=jnp.float32)

    @pl.when(k == nk - 1)
    def _():
        gf_ref[...] = (accf_ref[...] + bf_ref[...]).astype(gf_ref.dtype)
        gb_ref[...] = (accb_ref[...] + bb_ref[...]).astype(gb_ref.dtype)


def _project_gates(x2d, wf, wb, bf, bb, out_dtype, vmem_cap):
    M, Din = x2d.shape
    H4 = wf.shape[1]

    # M is a multiple of 64 by construction (Bp, Tp both multiples of 8).
    Mb = _pick_divisor(M, (256, 128, 64), M)
    Kb = Din if Din <= 1024 else _pick_divisor(Din, (512, 256, 128), Din)
    nm, nk = M // Mb, Din // Kb

    xsz = x2d.dtype.itemsize
    wsz = wf.dtype.itemsize
    gsz = jnp.dtype(out_dtype).itemsize
    est = (2 * Mb * Kb * xsz                 # x blocks (double-buffered)
           + 2 * 2 * Kb * H4 * wsz           # weight blocks
           + 2 * 2 * Mb * H4 * gsz           # two gate outputs
           + 2 * Mb * H4 * 4                 # f32 accumulators
           + 2 * 2 * H4 * 4)                 # biases
    vmem_limit = int(min(vmem_cap, max(est * 5 // 4 + (2 << 20), 16 << 20)))

    gf, gb = pl.pallas_call(
        _gate_proj_kernel,
        out_shape=(jax.ShapeDtypeStruct((M, H4), out_dtype),
                   jax.ShapeDtypeStruct((M, H4), out_dtype)),
        grid_spec=pltpu.PrefetchScalarGridSpec(
            num_scalar_prefetch=0,
            grid=(nm, nk),
            in_specs=[
                pl.BlockSpec((Mb, Kb), lambda m, k: (m, k)),
                pl.BlockSpec((Kb, H4), lambda m, k: (k, 0)),
                pl.BlockSpec((Kb, H4), lambda m, k: (k, 0)),
                pl.BlockSpec((1, H4), lambda m, k: (0, 0)),
                pl.BlockSpec((1, H4), lambda m, k: (0, 0)),
            ],
            out_specs=[
                pl.BlockSpec((Mb, H4), lambda m, k: (m, 0)),
                pl.BlockSpec((Mb, H4), lambda m, k: (m, 0)),
            ],
            scratch_shapes=[pltpu.VMEM((Mb, H4), jnp.float32),
                            pltpu.VMEM((Mb, H4), jnp.float32)]),
        compiler_params=pltpu.CompilerParams(
            dimension_semantics=("parallel", "arbitrary"),
            vmem_limit_bytes=vmem_limit),
    )(x2d, wf, wb, bf, bb)
    return gf, gb


# --------------------------------------------------------------------------
# Stage 2: fused bidirectional recurrence + max-pool + MLP head + log_softmax
# --------------------------------------------------------------------------
def _make_recurrence_kernel(T, Tp, Tc, nt, H, unroll):
    pad_t = Tp - T          # padded timesteps (masked in-kernel)

    def kernel(gf_ref, gb_ref, whhf_ref, whhb_ref, wh_ref, bh_ref,
               wo_ref, bo_ref, out_ref, state_ref):
        j = pl.program_id(1)

        # Reset carried state (h_f, c_f, h_b, c_b, m_f, m_b) at the first time
        # chunk of every batch block.  m tracks max_t relu(h); 0 is the identity.
        @pl.when(j == 0)
        def _():
            state_ref[...] = jnp.zeros_like(state_ref)

        whh_f = whhf_ref[...]
        whh_b = whhb_ref[...]

        def cell(gates, c_prev):
            # PyTorch LSTM gate order: i, f, g, o
            i_g = jax.nn.sigmoid(gates[:, 0 * H:1 * H])
            f_g = jax.nn.sigmoid(gates[:, 1 * H:2 * H])
            g_g = jnp.tanh(gates[:, 2 * H:3 * H])
            o_g = jax.nn.sigmoid(gates[:, 3 * H:4 * H])
            c_new = f_g * c_prev + i_g * g_g
            h_new = o_g * jnp.tanh(c_new)
            return h_new, c_new

        def step(t, carry):
            h_f, c_f, h_b, c_b, m_f, m_b = carry
            gf = gf_ref[t].astype(jnp.float32)            # contiguous (Bb, 4H) load
            gb = gb_ref[Tc - 1 - t].astype(jnp.float32)
            rec_f = jnp.dot(h_f.astype(whh_f.dtype), whh_f,
                            preferred_element_type=jnp.float32)
            rec_b = jnp.dot(h_b.astype(whh_b.dtype), whh_b,
                            preferred_element_type=jnp.float32)
            h_f_n, c_f_n = cell(gf + rec_f, c_f)
            h_b_n, c_b_n = cell(gb + rec_b, c_b)
            m_f_n = jnp.maximum(m_f, h_f_n)               # max_t relu(h): m starts at 0
            m_b_n = jnp.maximum(m_b, h_b_n)
            if pad_t:  # static: only emitted when T was padded
                gt = j * Tc + t
                ok_f = gt < T            # fwd pad lives at the end of time
                ok_b = gt >= pad_t       # bwd pad is consumed first
                h_f_n = jnp.where(ok_f, h_f_n, h_f)
                c_f_n = jnp.where(ok_f, c_f_n, c_f)
                m_f_n = jnp.where(ok_f, m_f_n, m_f)
                h_b_n = jnp.where(ok_b, h_b_n, h_b)
                c_b_n = jnp.where(ok_b, c_b_n, c_b)
                m_b_n = jnp.where(ok_b, m_b_n, m_b)
            return (h_f_n, c_f_n, h_b_n, c_b_n, m_f_n, m_b_n)

        carry0 = (state_ref[0], state_ref[1], state_ref[2],
                  state_ref[3], state_ref[4], state_ref[5])
        h_f, c_f, h_b, c_b, m_f, m_b = lax.fori_loop(
            0, Tc, step, carry0, unroll=unroll)

        state_ref[0] = h_f
        state_ref[1] = c_f
        state_ref[2] = h_b
        state_ref[3] = c_b
        state_ref[4] = m_f
        state_ref[5] = m_b

        # Head (Linear -> relu -> Linear -> log_softmax) after the last chunk.
        @pl.when(j == nt - 1)
        def _():
            # max_t(relu([h_f ; h_b])) == [max_t relu(h_f) ; max_t relu(h_b)]
            feat = jnp.concatenate([m_f, m_b], axis=-1)                # (Bb, 2H)
            hid = jnp.dot(feat.astype(wh_ref.dtype), wh_ref[...],
                          preferred_element_type=jnp.float32) + bh_ref[...]
            hid = jnp.maximum(hid, 0.0)
            logits = jnp.dot(hid.astype(wo_ref.dtype), wo_ref[...],
                             preferred_element_type=jnp.float32) + bo_ref[...]
            # log_softmax over the lane-padded class dim; padded columns carry
            # a -1e30 bias so exp() underflows to 0 and they cannot win the max.
            zmax = jnp.max(logits, axis=-1, keepdims=True)
            shifted = logits - zmax
            lse = jnp.log(jnp.sum(jnp.exp(shifted), axis=-1, keepdims=True))
            out_ref[...] = (shifted - lse).astype(out_ref.dtype)

    return kernel


def bilstm_head_forward(x_btd, params, *, compute_dtype=None, time_chunk=None):
    """x_btd: (B, T, Din) gathered BERT embeddings (Din = 4*input_size).

    Assumes the position_mask gather already removed padding timesteps (as in
    the PyTorch module).  Returns (B, O) log-probs (float32).
    """
    B, T, Din = x_btd.shape
    H = params["whh_f"].shape[0]
    H4 = 4 * H
    O = params["wo"].shape[1]
    cdt = jnp.dtype(compute_dtype) if compute_dtype is not None else x_btd.dtype
    wsz = jnp.dtype(cdt).itemsize

    # --- batch block: fill MXU rows (up to 128); pad batch to a multiple of it
    Bb = min(128, _round_up(B, 8))
    Bp = _round_up(B, Bb)
    nb = Bp // Bb

    # --- generation-aware VMEM budget
    try:
        phys_vmem = int(pltpu.get_tpu_info().vmem_capacity_bytes)
    except Exception:
        phys_vmem = 64 * 2 ** 20
    vmem_cap = min(int(phys_vmem * 0.8), 112 * 2 ** 20)

    # --- time chunk from the VMEM budget (never fall back to Tc = T)
    Op = _round_up(O, 128)
    fixed = (2 * (2 * H * H4 + (2 * H) * (2 * H) + 2 * H * Op) * wsz  # weights (2-buffered)
             + 2 * (2 * H4 + 2 * H + Op) * 4                          # biases
             + 6 * Bb * max(H, 128) * 4                               # state scratch
             + 2 * Bb * Op * 4)                                       # output block
    per_t = 2 * 2 * Bb * H4 * wsz        # fwd+bwd gate streams, double-buffered
    tc_budget = max(8, int((vmem_cap - fixed) // max(per_t, 1)) // 8 * 8)
    if time_chunk is not None:
        tc_budget = max(8, min(tc_budget, _round_up(time_chunk, 8)))
    Tc = int(min(tc_budget, _round_up(T, 8)))
    Tp = _round_up(T, Tc)
    nt = Tp // Tc

    # --- pad inputs; cast MXU operands to the compute dtype (biases stay f32)
    xp = x_btd
    if Bp != B or Tp != T:
        xp = jnp.pad(x_btd, ((0, Bp - B), (0, Tp - T), (0, 0)))
    x2d = xp.reshape(Bp * Tp, Din).astype(cdt)

    wih_f = params["wih_f"].astype(cdt)
    wih_b = params["wih_b"].astype(cdt)
    b_f = params["b_f"].astype(jnp.float32)
    b_b = params["b_b"].astype(jnp.float32)

    gf2d, gb2d = _project_gates(x2d, wih_f, wih_b, b_f, b_b, cdt, vmem_cap)

    # Time-major gate streams so the per-step load in the recurrence is a
    # contiguous (Bb, 4H) slab (small tensors; one cheap XLA transpose).
    gf_t = gf2d.reshape(Bp, Tp, H4).transpose(1, 0, 2)
    gb_t = gb2d.reshape(Bp, Tp, H4).transpose(1, 0, 2)

    whh_f = params["whh_f"].astype(cdt)
    whh_b = params["whh_b"].astype(cdt)
    wh = params["wh"].astype(cdt)
    bh = params["bh"].astype(jnp.float32)
    wo_p = jnp.zeros((2 * H, Op), cdt).at[:, :O].set(params["wo"].astype(cdt))
    bo_p = jnp.full((1, Op), -1e30, jnp.float32).at[:, :O].set(
        params["bo"].astype(jnp.float32))

    kernel = _make_recurrence_kernel(T, Tp, Tc, nt, H, unroll=min(8, Tc))

    full = lambda b, t: (0, 0)
    in_specs = [
        pl.BlockSpec((Tc, Bb, H4), lambda b, t: (t, b, 0)),             # fwd gate chunks
        pl.BlockSpec((Tc, Bb, H4), lambda b, t: (nt - 1 - t, b, 0)),    # bwd gate chunks (reversed)
        pl.BlockSpec((H, H4), full),                                    # W_hh fwd
        pl.BlockSpec((H, H4), full),                                    # W_hh bwd
        pl.BlockSpec((2 * H, 2 * H), full),                             # hidden Linear
        pl.BlockSpec((1, 2 * H), full),
        pl.BlockSpec((2 * H, Op), full),                                # out Linear (lane-padded)
        pl.BlockSpec((1, Op), full),
    ]
    out_specs = pl.BlockSpec((Bb, Op), lambda b, t: (b, 0))

    est = fixed + per_t * Tc
    vmem_limit = int(min(vmem_cap, max(est * 5 // 4 + (2 << 20), 16 << 20)))

    out_full = pl.pallas_call(
        kernel,
        out_shape=jax.ShapeDtypeStruct((Bp, Op), jnp.float32),
        grid_spec=pltpu.PrefetchScalarGridSpec(
            num_scalar_prefetch=0,
            grid=(nb, nt),
            in_specs=in_specs,
            out_specs=out_specs,
            scratch_shapes=[pltpu.VMEM((6, Bb, H), jnp.float32)]),
        compiler_params=pltpu.CompilerParams(
            dimension_semantics=("parallel", "arbitrary"),
            vmem_limit_bytes=vmem_limit),
    )(gf_t, gb_t, whh_f, whh_b, wh, bh, wo_p, bo_p)

    return out_full[:B, :O]


# --------------------------------------------------------------------------
# Pure-JAX reference and parameter init (mirrors the PyTorch forward)
# --------------------------------------------------------------------------
def reference_forward(x_btd, params):
    B, T, Din = x_btd.shape
    H = params["whh_f"].shape[0]

    def run_dir(wih, whh, b, reverse):
        ts = range(T - 1, -1, -1) if reverse else range(T)
        h = jnp.zeros((B, H), jnp.float32)
        c = jnp.zeros((B, H), jnp.float32)
        hs = [None] * T
        for t in ts:
            g = x_btd[:, t, :] @ wih + h @ whh + b
            i_g = jax.nn.sigmoid(g[:, 0 * H:1 * H])
            f_g = jax.nn.sigmoid(g[:, 1 * H:2 * H])
            g_g = jnp.tanh(g[:, 2 * H:3 * H])
            o_g = jax.nn.sigmoid(g[:, 3 * H:4 * H])
            c = f_g * c + i_g * g_g
            h = o_g * jnp.tanh(c)
            hs[t] = h
        return jnp.stack(hs, axis=1)                                   # (B, T, H)

    hf = run_dir(params["wih_f"], params["whh_f"], params["b_f"], False)
    hb = run_dir(params["wih_b"], params["whh_b"], params["b_b"], True)
    out = jnp.concatenate([hf, hb], axis=-1)                           # (B, T, 2H)
    pooled = jnp.max(jax.nn.relu(out), axis=1)                         # (B, 2H)
    hid = pooled @ params["wh"] + params["bh"]
    logits = jax.nn.relu(hid) @ params["wo"] + params["bo"]
    return jax.nn.log_softmax(logits, axis=-1)


def init_params(key, input_size, hidden_size, output_size):
    Din = 4 * input_size          # concat_all=True
    H = hidden_size
    O = output_size
    ks = jax.random.split(key, 12)
    s = 1.0 / jnp.sqrt(H)

    def u(k, shape, scale):
        return jax.random.uniform(k, shape, jnp.float32, -scale, scale)

    return {
        # LSTM, forward direction (weights stored transposed: (in, out))
        "wih_f": u(ks[0], (Din, 4 * H), s),
        "whh_f": u(ks[1], (H, 4 * H), s),
        "b_f":   u(ks[2], (1, 4 * H), s) + u(ks[3], (1, 4 * H), s),    # b_ih + b_hh
        # LSTM, reverse direction
        "wih_b": u(ks[4], (Din, 4 * H), s),
        "whh_b": u(ks[5], (H, 4 * H), s),
        "b_b":   u(ks[6], (1, 4 * H), s) + u(ks[7], (1, 4 * H), s),
        # hidden Linear(2H, 2H) and out Linear(2H, O)
        "wh": u(ks[8], (2 * H, 2 * H), 1.0 / jnp.sqrt(2 * H)),
        "bh": u(ks[9], (1, 2 * H), 1.0 / jnp.sqrt(2 * H)),
        "wo": u(ks[10], (2 * H, O), 1.0 / jnp.sqrt(2 * H)),
        "bo": u(ks[11], (1, O), 1.0 / jnp.sqrt(2 * H)),
    }


if __name__ == "__main__":
    key = jax.random.PRNGKey(0)
    k_x, k_p = jax.random.split(key)

    B, T = 2, 8
    input_size, hidden_size, output_size = 32, 32, 8
    Din = 4 * input_size  # 128 (concat_all=True)

    params = init_params(k_p, input_size, hidden_size, output_size)
    x = jax.random.normal(k_x, (B, T, Din), jnp.float32)  # stand-in for gathered BERT embeddings

    out = jax.block_until_ready(bilstm_head_forward(x, params))
    ref = jax.block_until_ready(reference_forward(x, params))

    assert out.shape == (B, output_size)
    assert bool(jnp.allclose(out, ref, atol=1e-4, rtol=1e-4)), "kernel/reference mismatch"
    print("KERNEL_OK")
</pallas_src>

<mosaic_0001>
module attributes {stable_mosaic.version = 11 : i64} {
  func.func @_gate_proj_kernel(%arg0: i32, %arg1: i32, %arg2: memref<64x128xf32, #tpu.memory_space<vmem>>, %arg3: memref<128x128xf32, #tpu.memory_space<vmem>>, %arg4: memref<128x128xf32, #tpu.memory_space<vmem>>, %arg5: memref<1x128xf32, #tpu.memory_space<vmem>>, %arg6: memref<1x128xf32, #tpu.memory_space<vmem>>, %arg7: memref<64x128xf32, #tpu.memory_space<vmem>>, %arg8: memref<64x128xf32, #tpu.memory_space<vmem>>, %arg9: memref<64x128xf32, #tpu.memory_space<vmem>>, %arg10: memref<64x128xf32, #tpu.memory_space<vmem>>) attributes {dimension_semantics = [#tpu.dimension_semantics<parallel>, #tpu.dimension_semantics<arbitrary>], iteration_bounds = array<i64: 1, 1>, scalar_prefetch = 0 : i64, scratch_operands = 2 : i64, tpu.core_type = #tpu.core_type<tc>, window_params = [{transform_indices = @transform_0, window_bounds = array<i64: 64, 128>}, {transform_indices = @transform_1, window_bounds = array<i64: 128, 128>}, {transform_indices = @transform_2, window_bounds = array<i64: 128, 128>}, {pipeline_mode = #tpu.pipeline_mode<synchronous>, transform_indices = @transform_3, window_bounds = array<i64: 1, 128>}, {pipeline_mode = #tpu.pipeline_mode<synchronous>, transform_indices = @transform_4, window_bounds = array<i64: 1, 128>}, {transform_indices = @transform_5, window_bounds = array<i64: 64, 128>}, {transform_indices = @transform_6, window_bounds = array<i64: 64, 128>}]} {
    %c0_i32 = arith.constant 0 : i32
    %0 = arith.cmpi eq, %arg1, %c0_i32 : i32
    %1 = arith.extui %0 : i1 to i32
    %c0_i32_0 = arith.constant 0 : i32
    %2 = arith.cmpi ne, %1, %c0_i32_0 : i32
    scf.if %2 {
      %cst_17 = arith.constant 0.000000e+00 : f32
      %17 = vector.broadcast %cst_17 : f32 to vector<64x128xf32>
      %c0_18 = arith.constant 0 : index
      %c0_19 = arith.constant 0 : index
      %18 = vector.load %arg9[%c0_18, %c0_19] : memref<64x128xf32, #tpu.memory_space<vmem>>, vector<64x128xf32>
      tpu.vector_store %arg9[%c0_18, %c0_19], %17 {strides = array<i32>} : memref<64x128xf32, #tpu.memory_space<vmem>>, vector<64x128xf32>,
      %cst_20 = arith.constant 0.000000e+00 : f32
      %19 = vector.broadcast %cst_20 : f32 to vector<64x128xf32>
      %c0_21 = arith.constant 0 : index
      %c0_22 = arith.constant 0 : index
      %20 = vector.load %arg10[%c0_21, %c0_22] : memref<64x128xf32, #tpu.memory_space<vmem>>, vector<64x128xf32>
      tpu.vector_store %arg10[%c0_21, %c0_22], %19 {strides = array<i32>} : memref<64x128xf32, #tpu.memory_space<vmem>>, vector<64x128xf32>,
    } else {
    }
    %c0 = arith.constant 0 : index
    %c0_1 = arith.constant 0 : index
    %3 = vector.load %arg2[%c0, %c0_1] : memref<64x128xf32, #tpu.memory_space<vmem>>, vector<64x128xf32>
    %c0_2 = arith.constant 0 : index
    %c0_3 = arith.constant 0 : index
    %4 = vector.load %arg9[%c0_2, %c0_3] : memref<64x128xf32, #tpu.memory_space<vmem>>, vector<64x128xf32>
    %c0_4 = arith.constant 0 : index
    %c0_5 = arith.constant 0 : index
    %5 = vector.load %arg3[%c0_4, %c0_5] : memref<128x128xf32, #tpu.memory_space<vmem>>, vector<128x128xf32>
    %cst = arith.constant dense<0.000000e+00> : vector<64x128xf32>
    %6 = tpu.matmul %3, %5, %cst {dimension_numbers = #tpu.dot_dimension_numbers<[1], [0], [0], [1], [0, 0, 1, 1], [], []>} : vector<64x128xf32>, vector<128x128xf32>, vector<64x128xf32> -> vector<64x128xf32>
    %7 = arith.addf %4, %6 : vector<64x128xf32>
    %c0_6 = arith.constant 0 : index
    %c0_7 = arith.constant 0 : index
    %8 = vector.load %arg9[%c0_6, %c0_7] : memref<64x128xf32, #tpu.memory_space<vmem>>, vector<64x128xf32>
    tpu.vector_store %arg9[%c0_6, %c0_7], %7 {strides = array<i32>} : memref<64x128xf32, #tpu.memory_space<vmem>>, vector<64x128xf32>,
    %c0_8 = arith.constant 0 : index
    %c0_9 = arith.constant 0 : index
    %9 = vector.load %arg10[%c0_8, %c0_9] : memref<64x128xf32, #tpu.memory_space<vmem>>, vector<64x128xf32>
    %c0_10 = arith.constant 0 : index
    %c0_11 = arith.constant 0 : index
    %10 = vector.load %arg4[%c0_10, %c0_11] : memref<128x128xf32, #tpu.memory_space<vmem>>, vector<128x128xf32>
    %cst_12 = arith.constant dense<0.000000e+00> : vector<64x128xf32>
    %11 = tpu.matmul %3, %10, %cst_12 {dimension_numbers = #tpu.dot_dimension_numbers<[1], [0], [0], [1], [0, 0, 1, 1], [], []>} : vector<64x128xf32>, vector<128x128xf32>, vector<64x128xf32> -> vector<64x128xf32>
    %12 = arith.addf %9, %11 : vector<64x128xf32>
    %c0_13 = arith.constant 0 : index
    %c0_14 = arith.constant 0 : index
    %13 = vector.load %arg10[%c0_13, %c0_14] : memref<64x128xf32, #tpu.memory_space<vmem>>, vector<64x128xf32>
    tpu.vector_store %arg10[%c0_13, %c0_14], %12 {strides = array<i32>} : memref<64x128xf32, #tpu.memory_space<vmem>>, vector<64x128xf32>,
    %c0_i32_15 = arith.constant 0 : i32
    %14 = arith.cmpi eq, %arg1, %c0_i32_15 : i32
    %15 = arith.extui %14 : i1 to i32
    %c0_i32_16 = arith.constant 0 : i32
    %16 = arith.cmpi ne, %15, %c0_i32_16 : i32
    scf.if %16 {
      %c0_17 = arith.constant 0 : index
      %c0_18 = arith.constant 0 : index
      %17 = vector.load %arg9[%c0_17, %c0_18] : memref<64x128xf32, #tpu.memory_space<vmem>>, vector<64x128xf32>
      %c0_19 = arith.constant 0 : index
      %c0_20 = arith.constant 0 : index
      %18 = vector.load %arg5[%c0_19, %c0_20] : memref<1x128xf32, #tpu.memory_space<vmem>>, vector<1x128xf32>
      %19 = vector.broadcast %18 : vector<1x128xf32> to vector<64x128xf32>
      %20 = arith.addf %17, %19 : vector<64x128xf32>
      %c0_21 = arith.constant 0 : index
      %c0_22 = arith.constant 0 : index
      %21 = vector.load %arg7[%c0_21, %c0_22] : memref<64x128xf32, #tpu.memory_space<vmem>>, vector<64x128xf32>
      tpu.vector_store %arg7[%c0_21, %c0_22], %20 {strides = array<i32>} : memref<64x128xf32, #tpu.memory_space<vmem>>, vector<64x128xf32>,
      %c0_23 = arith.constant 0 : index
      %c0_24 = arith.constant 0 : index
      %22 = vector.load %arg10[%c0_23, %c0_24] : memref<64x128xf32, #tpu.memory_space<vmem>>, vector<64x128xf32>
      %c0_25 = arith.constant 0 : index
      %c0_26 = arith.constant 0 : index
      %23 = vector.load %arg6[%c0_25, %c0_26] : memref<1x128xf32, #tpu.memory_space<vmem>>, vector<1x128xf32>
      %24 = vector.broadcast %23 : vector<1x128xf32> to vector<64x128xf32>
      %25 = arith.addf %22, %24 : vector<64x128xf32>
      %c0_27 = arith.constant 0 : index
      %c0_28 = arith.constant 0 : index
      %26 = vector.load %arg8[%c0_27, %c0_28] : memref<64x128xf32, #tpu.memory_space<vmem>>, vector<64x128xf32>
      tpu.vector_store %arg8[%c0_27, %c0_28], %25 {strides = array<i32>} : memref<64x128xf32, #tpu.memory_space<vmem>>, vector<64x128xf32>,
    } else {
    }
    return
  }
  func.func @transform_0(%arg0: i32, %arg1: i32) -> (i32, i32) {
    %c0_i32 = arith.constant 0 : i32
    return %arg0, %arg1 : i32, i32
  }
  func.func @transform_1(%arg0: i32, %arg1: i32) -> (i32, i32) {
    %c0_i32 = arith.constant 0 : i32
    %c0_i32_0 = arith.constant 0 : i32
    return %arg1, %c0_i32 : i32, i32
  }
  func.func @transform_2(%arg0: i32, %arg1: i32) -> (i32, i32) {
    %c0_i32 = arith.constant 0 : i32
    %c0_i32_0 = arith.constant 0 : i32
    return %arg1, %c0_i32 : i32, i32
  }
  func.func @transform_3(%arg0: i32, %arg1: i32) -> (i32, i32) {
    %c0_i32 = arith.constant 0 : i32
    %c0_i32_0 = arith.constant 0 : i32
    %c0_i32_1 = arith.constant 0 : i32
    return %c0_i32, %c0_i32_0 : i32, i32
  }
  func.func @transform_4(%arg0: i32, %arg1: i32) -> (i32, i32) {
    %c0_i32 = arith.constant 0 : i32
    %c0_i32_0 = arith.constant 0 : i32
    %c0_i32_1 = arith.constant 0 : i32
    return %c0_i32, %c0_i32_0 : i32, i32
  }
  func.func @transform_5(%arg0: i32, %arg1: i32) -> (i32, i32) {
    %c0_i32 = arith.constant 0 : i32
    %c0_i32_0 = arith.constant 0 : i32
    return %arg0, %c0_i32 : i32, i32
  }
  func.func @transform_6(%arg0: i32, %arg1: i32) -> (i32, i32) {
    %c0_i32 = arith.constant 0 : i32
    %c0_i32_0 = arith.constant 0 : i32
    return %arg0, %c0_i32 : i32, i32
  }
}

</mosaic_0001>

<bundles_post_ra>
// kernel: tpu_custom_call.1
= control target key start
LH: loop header
LB: loop body
LE: loop exit
PB: predicated region body
PF: predicated region fallthrough
CT: control target
= control target key end

     0   :  { %12 = vsyncpa [#allocation5], 0  ;;  %s946_s0 = inlined_call_operand.hbm [shape: f32[64,128], index: 0, kind: input, shape index: {}]   ;;  %s947_s1 = inlined_call_operand.hbm [shape: f32[128,128], index: 1, kind: input, shape index: {}]   ;;  %s948_s2 = inlined_call_operand.hbm [shape: f32[128,128], index: 2, kind: input, shape index: {}]   ;;  %s949_s3 = inlined_call_operand.vmem [shape: f32[1,128], index: 3, kind: input, shape index: {}]   ;;  %s950_s4 = inlined_call_operand.vmem [shape: f32[1,128], index: 4, kind: input, shape index: {}]   ;;  %s951_s5 = inlined_call_operand.hbm [shape: f32[64,128], index: 5, kind: output, shape index: {0}]   ;;  %s952_s6 = inlined_call_operand.hbm [shape: f32[64,128], index: 6, kind: output, shape index: {1}]  }
   0x1   :  { %13 = vsyncpa [#allocation8], 0 }
   0x2   :  { %14 = vsyncpa [#allocation6], 0 }
   0x3   :  { %15 = vsyncpa [#allocation12], 0  ;;  %s809_s21 = smov [#allocation7]   ;;  %s810_s23 = smov [#allocation4]  }
   0x4   :  { %s33_s22 = sshll.u32 %s809_s21, 4  ;;  %s21_s24 = sshll.u32 %s810_s23, 4  ;;  %s34_s22 = int_to_ptr.vmem [resolvable:$true] %s33_s22  ;;  %s851_s24 = int_to_ptr.vmem [resolvable:$true] %s21_s24 }
   0x5   :  { %s691_s27 = scalar_lea.hbm %s947_s1, 2048 }
   0x6   :  { %p692_p0 = scmp.ne.s32.totalorder %s947_s1, %s691_s27  ;;  %p695_p1 = scmp.lt.u32.totalorder %s691_s27, %s947_s1 }
   0x8   :  { %p697_p2 = pnand %p695_p1, %p692_p0 }
   0xa   :  { %700 = shalt.err (!%p697_p2)
}
   0xb   :  { %s701_s8 = scalar_lea.vmem %s34_s22, 2048  ;;  %p706_p4 = scmp.lt.s32.totalorder %s34_s22, %s34_s22 }
   0xc   :  { %p702_p3 = scmp.ne.s32.totalorder %s34_s22, %s701_s8  ;;  %p707_p5 = scmp.lt.s32.totalorder %s701_s8, %s701_s8 }
   0xe   :  { %p708_p6 = por %p707_p5, %p706_p4 }
  0x10   :  { %p709_p7 = pnand %p708_p6, %p702_p3 }
  0x12   :  { %712 = shalt.err (!%p709_p7)
}
  0x13   :  { %s811_s9 = smov 128   ;;  %s812_s10 = smov 8  }
  0x14   :  { %39 = dma.hbm_to_vmem [thread:$0]  %s947_s1, 2048, %s34_s22, [#allocation8], %s811_s9, %s811_s9, %s812_s10  }
  0x15   :  { %s713_s15 = scalar_lea.hbm %s946_s0, 1024 }
  0x16   :  { %p714_p8 = scmp.ne.s32.totalorder %s946_s0, %s713_s15  ;;  %p717_p9 = scmp.lt.u32.totalorder %s713_s15, %s946_s0 }
  0x18   :  { %p719_p10 = pnand %p717_p9, %p714_p8 }
  0x1a   :  { %722 = shalt.err (!%p719_p10)
}
  0x1b   :  { %s723_s20 = scalar_lea.vmem %s851_s24, 1024  ;;  %p728_p12 = scmp.lt.s32.totalorder %s851_s24, %s851_s24 }
  0x1c   :  { %p724_p11 = scmp.ne.s32.totalorder %s851_s24, %s723_s20  ;;  %p729_p13 = scmp.lt.s32.totalorder %s723_s20, %s723_s20 }
  0x1e   :  { %p730_p0 = por %p729_p13, %p728_p12 }
  0x20   :  { %p731_p1 = pnand %p730_p0, %p724_p11 }
  0x22   :  { %734 = shalt.err (!%p731_p1)
}
  0x23   :  { %27 = dma.hbm_to_vmem [thread:$0]  %s946_s0, 1024, %s851_s24, [#allocation5], %s811_s9, %s811_s9, %s812_s10  }
  0x24   :  { %s813_s22 = smov [#allocation9]   ;;  %s735_s27 = scalar_lea.hbm %s948_s2, 2048 }
  0x25   :  { %s45_s23 = sshll.u32 %s813_s22, 4  ;;  %p736_p2 = scmp.ne.s32.totalorder %s948_s2, %s735_s27  ;;  %s46_s23 = int_to_ptr.vmem [resolvable:$true] %s45_s23 }
  0x26   :  { %p739_p3 = scmp.lt.u32.totalorder %s735_s27, %s948_s2 }
  0x28   :  { %p741_p4 = pnand %p739_p3, %p736_p2 }
  0x2a   :  { %744 = shalt.err (!%p741_p4)
}
  0x2b   :  { %s745_s8 = scalar_lea.vmem %s46_s23, 2048  ;;  %p750_p6 = scmp.lt.s32.totalorder %s46_s23, %s46_s23 }
  0x2c   :  { %p746_p5 = scmp.ne.s32.totalorder %s46_s23, %s745_s8  ;;  %p751_p7 = scmp.lt.s32.totalorder %s745_s8, %s745_s8 }
  0x2e   :  { %p752_p8 = por %p751_p7, %p750_p6 }
  0x30   :  { %p753_p9 = pnand %p752_p8, %p746_p5 }
  0x32   :  { %756 = shalt.err (!%p753_p9)
}
  0x33   :  { %51 = dma.hbm_to_vmem [thread:$0]  %s948_s2, 2048, %s46_s23, [#allocation8], %s811_s9, %s811_s9, %s812_s10  }
  0x34   :  { %801 = dma.done.wait [#allocation5], 1024  }
  0x35   :  { %802 = vsyncadd [#allocation5], 4294966272 }
  0x36   :  { %803 = dma.done.wait [#allocation8], 4096  }
  0x37   :  { %804 = vsyncadd [#allocation8], 4294963200  ;;  %v101_v0 = vld [vmem:[#allocation7] sm:$0xff]  ;;  %v102_v1 = vld [vmem:[#allocation7 + $0x8] sm:$0xff]  ;;  %s815_s14 = smov [#allocation11]  }
  0x38   :  { %v246_v2 = vld [vmem:[#allocation9] sm:$0xff]  ;;  %v620_v3 = vpack.c.bf16 %v102_v1, %v101_v0  ;;  %v247_v4 = vld [vmem:[#allocation9 + $0x8] sm:$0xff]  ;;  %v103_v5 = vld [vmem:[#allocation7 + $0x10] sm:$0xff]  ;;  %s465_s15 = sshll.u32 %s815_s14, 4  ;;  %s909_s15 = int_to_ptr.vmem [resolvable:$true] %s465_s15 }
  0x39   :  { %v104_v6 = vld [vmem:[#allocation7 + $0x18] sm:$0xff]  ;;  %v652_v7 = vpack.c.bf16 %v247_v4, %v246_v2  ;;  %v248_v9 = vld [vmem:[#allocation9 + $0x10] sm:$0xff]  ;;  %v105_v11 = vld [vmem:[#allocation7 + $0x20] sm:$0xff] }
  0x3a   :  { %v624_v8 = vpack.c.bf16 %v104_v6, %v103_v5  ;;  %v249_v10 = vld [vmem:[#allocation9 + $0x18] sm:$0xff]  ;;  %621 = vmatprep.subr.bf16.mxu0 %v620_v3  ;;  %v106_v13 = vld [vmem:[#allocation7 + $0x28] sm:$0xff]  ;;  %v250_v14 = vld [vmem:[#allocation9 + $0x20] sm:$0xff] }
  0x3b   :  { %v656_v12 = vpack.c.bf16 %v249_v10, %v248_v9  ;;  %v251_v15 = vld [vmem:[#allocation9 + $0x28] sm:$0xff]  ;;  %653 = vmatprep.subr.bf16.mxu1 %v652_v7  ;;  %623 = vmatpush3.bf16.msra.mxu0 %v620_v3  ;;  %v628_v16 = vpack.c.bf16 %v106_v13, %v105_v11  ;;  %v107_v18 = vld [vmem:[#allocation7 + $0x30] sm:$0xff]  ;;  %v108_v19 = vld [vmem:[#allocation7 + $0x38] sm:$0xff] }
  0x3c   :  { %655 = vmatpush3.bf16.msra.mxu1 %v652_v7  ;;  %625 = vmatprep.subr.bf16.mxu0 %v624_v8  ;;  %v660_v17 = vpack.c.bf16 %v251_v15, %v250_v14  ;;  %v252_v20 = vld [vmem:[#allocation9 + $0x30] sm:$0xff]  ;;  %v253_v21 = vld [vmem:[#allocation9 + $0x38] sm:$0xff]  ;;  %v632_v22 = vpack.c.bf16 %v108_v19, %v107_v18  ;;  %v109_v24 = vld [vmem:[#allocation7 + $0x40] sm:$0xff] }
  0x3d   :  { %657 = vmatprep.subr.bf16.mxu1 %v656_v12  ;;  %v664_v23 = vpack.c.bf16 %v253_v21, %v252_v20  ;;  %v110_v25 = vld [vmem:[#allocation7 + $0x48] sm:$0xff]  ;;  %v85_v26 = vld [vmem:[#allocation4] sm:$0xff]  ;;  %v111_v31 = vld [vmem:[#allocation7 + $0x50] sm:$0xff] }
  0x3e   :  { %v254_v27 = vld [vmem:[#allocation9 + $0x40] sm:$0xff]  ;;  %v255_v28 = vld [vmem:[#allocation9 + $0x48] sm:$0xff]  ;;  %564 = vmatprep.mubr.f32.mxu0 %v85_v26  ;;  %608 = vmatprep.mubr.f32.mxu1 %v85_v26  ;;  %v636_v29 = vpack.c.bf16 %v110_v25, %v109_v24  ;;  %v112_v32 = vld [vmem:[#allocation7 + $0x58] sm:$0xff] }
  0x3f   :  { %627 = vmatpush3.bf16.msra.mxu0 %v624_v8  ;;  %v668_v30 = vpack.c.bf16 %v255_v28, %v254_v27  ;;  %v256_v33 = vld [vmem:[#allocation9 + $0x50] sm:$0xff]  ;;  %v257_v34 = vld [vmem:[#allocation9 + $0x58] sm:$0xff]  ;;  %v640_v35 = vpack.c.bf16 %v112_v32, %v111_v31  ;;  %v113_v37 = vld [vmem:[#allocation7 + $0x60] sm:$0xff] }
  0x40   :  { %659 = vmatpush3.bf16.msra.mxu1 %v656_v12  ;;  %629 = vmatprep.subr.bf16.mxu0 %v628_v16  ;;  %v672_v36 = vpack.c.bf16 %v257_v34, %v256_v33  ;;  %v114_v38 = vld [vmem:[#allocation7 + $0x68] sm:$0xff]  ;;  %v258_v39 = vld [vmem:[#allocation9 + $0x60] sm:$0xff]  ;;  %v115_v43 = vld [vmem:[#allocation7 + $0x70] sm:$0xff] }
  0x41   :  { %661 = vmatprep.subr.bf16.mxu1 %v660_v17  ;;  %v259_v40 = vld [vmem:[#allocation9 + $0x68] sm:$0xff]  ;;  %v644_v41 = vpack.c.bf16 %v114_v38, %v113_v37  ;;  %v116_v44 = vld [vmem:[#allocation7 + $0x78] sm:$0xff]  ;;  %v260_v45 = vld [vmem:[#allocation9 + $0x70] sm:$0xff] }
  0x42   :  { %v676_v42 = vpack.c.bf16 %v259_v40, %v258_v39  ;;  %v261_v46 = vld [vmem:[#allocation9 + $0x78] sm:$0xff]  ;;  %v648_v47 = vpack.c.bf16 %v116_v44, %v115_v43  ;;  %v86_v49 = vld [vmem:[#allocation4 + $0x8] sm:$0xff]  ;;  %v87_v50 = vld [vmem:[#allocation4 + $0x10] sm:$0xff] }
  0x43   :  { %631 = vmatpush3.bf16.msra.mxu0 %v628_v16  ;;  %v680_v48 = vpack.c.bf16 %v261_v46, %v260_v45  ;;  %v88_v51 = vld [vmem:[#allocation4 + $0x18] sm:$0xff]  ;;  %v89_v52 = vld [vmem:[#allocation4 + $0x20] sm:$0xff]  ;;  %v90_v53 = vld [vmem:[#allocation4 + $0x28] sm:$0xff] }
  0x44   :  { %663 = vmatpush3.bf16.msra.mxu1 %v660_v17  ;;  %633 = vmatprep.subr.bf16.mxu0 %v632_v22  ;;  %v91_v54 = vld [vmem:[#allocation4 + $0x30] sm:$0xff]  ;;  %v92_v55 = vld [vmem:[#allocation4 + $0x38] sm:$0xff]  ;;  %v482_v56 = vld [vmem:[%s949_s3] ss:$0 sm:$0xff]  ;;  %s814_s3 = smov [#allocation10]  }
  0x45   :  { %665 = vmatprep.subr.bf16.mxu1 %v664_v23  ;;  %v483_v57 = vld [vmem:[%s950_s4] ss:$0 sm:$0xff]  ;;  %s453_s4 = sshll.u32 %s814_s3, 4  ;;  %s454_s4 = int_to_ptr.vmem [resolvable:$true] %s453_s4 }
  0x46   :  { %s757_s16 = scalar_lea.vmem %s454_s4, 1024  ;;  %p762_p11 = scmp.lt.s32.totalorder %s454_s4, %s454_s4 }
  0x47   :  { %635 = vmatpush3.bf16.msra.mxu0 %v632_v22  ;;  %p758_p10 = scmp.ne.s32.totalorder %s454_s4, %s757_s16  ;;  %p763_p12 = scmp.lt.s32.totalorder %s757_s16, %s757_s16 }
  0x48   :  { %667 = vmatpush3.bf16.msra.mxu1 %v664_v23  ;;  %637 = vmatprep.subr.bf16.mxu0 %v636_v29 }
  0x49   :  { %669 = vmatprep.subr.bf16.mxu1 %v668_v30  ;;  %p764_p13 = por %p763_p12, %p762_p11 }
  0x4b   :  { %639 = vmatpush3.bf16.msra.mxu0 %v636_v29  ;;  %p765_p0 = pnand %p764_p13, %p758_p10 }
  0x4c   :  { %671 = vmatpush3.bf16.msra.mxu1 %v668_v30  ;;  %641 = vmatprep.subr.bf16.mxu0 %v640_v35 }
  0x4d   :  { %673 = vmatprep.subr.bf16.mxu1 %v672_v36 }
  0x4f   :  { %643 = vmatpush3.bf16.msra.mxu0 %v640_v35 }
  0x50   :  { %675 = vmatpush3.bf16.msra.mxu1 %v672_v36  ;;  %645 = vmatprep.subr.bf16.mxu0 %v644_v41 }
  0x51   :  { %677 = vmatprep.subr.bf16.mxu1 %v676_v42 }
  0x53   :  { %647 = vmatpush3.bf16.msra.mxu0 %v644_v41 }
  0x54   :  { %679 = vmatpush3.bf16.msra.mxu1 %v676_v42  ;;  %649 = vmatprep.subr.bf16.mxu0 %v648_v47 }
  0x55   :  { %681 = vmatprep.subr.bf16.mxu1 %v680_v48 }
  0x57   :  { %651 = vmatpush3.bf16.msra.mxu0 %v648_v47 }
  0x58   :  { %683 = vmatpush3.bf16.msra.mxu1 %v680_v48 }
  0x5a   :  { %565 = vmatmul.mubr.f32.vlgmr.msra.gmra.mrb[0].mxu0 %v86_v49 }
  0x5b   :  { %609 = vmatmul.mubr.f32.vlgmr.msra.gmra.mrb[0].mxu1 %v86_v49  ;;  %567 = vmatprep.mubr.f32.mxu0 %v87_v50 }
  0x5c   :  { %611 = vmatprep.mubr.f32.mxu1 %v87_v50 }
  0x5e   :  { %568 = vmatmul.mubr.f32.gmra.mrb[2].mxu0 %v88_v51 }
  0x5f   :  { %612 = vmatmul.mubr.f32.gmra.mrb[2].mxu1 %v88_v51  ;;  %570 = vmatprep.mubr.f32.mxu0 %v89_v52 }
  0x60   :  { %614 = vmatprep.mubr.f32.mxu1 %v89_v52 }
  0x62   :  { %571 = vmatmul.mubr.f32.gmra.mrb[4].mxu0 %v90_v53 }
  0x63   :  { %615 = vmatmul.mubr.f32.gmra.mrb[4].mxu1 %v90_v53  ;;  %573 = vmatprep.mubr.f32.mxu0 %v91_v54 }
  0x64   :  { %617 = vmatprep.mubr.f32.mxu1 %v91_v54 }
  0x66   :  { %574 = vmatmul.mubr.f32.gmra.mrb[6].mxu0 %v92_v55 }
  0x67   :  { %618 = vmatmul.mubr.f32.gmra.mrb[6].mxu1 %v92_v55 }
 0x12d   :  { %v566_v58 = vpop.f32.mrb[0].mxu0 }
 0x12e   :  { %v402_v59 = vadd.f32 %v566_v58, %v482_v56  ;;  %v610_v60 = vpop.f32.mrb[0].mxu1  ;;  %v183_v61 = vpop.f32.mrb[1].mxu0 }
 0x12f   :  { %v433_v62 = vadd.f32 %v610_v60, %v483_v57  ;;  %v401_v63 = vadd.f32 %v482_v56, %v183_v61  ;;  %v328_v0 = vpop.f32.mrb[1].mxu1 }
 0x130   :  { %410 = vst [vmem:[#allocation10 + $0x8] sm:$0xff] %v402_v59  ;;  %v432_v1 = vadd.f32 %v483_v57, %v328_v0 }
 0x131   :  { %441 = vst [vmem:[#allocation11 + $0x8] sm:$0xff] %v433_v62  ;;  %409 = vst [vmem:[#allocation10] sm:$0xff] %v401_v63  ;;  %v569_v2 = vpop.f32.mrb[2].mxu0 }
 0x132   :  { %440 = vst [vmem:[#allocation11] sm:$0xff] %v432_v1  ;;  %v404_v3 = vadd.f32 %v569_v2, %v482_v56  ;;  %v613_v4 = vpop.f32.mrb[2].mxu1  ;;  %v193_v5 = vpop.f32.mrb[3].mxu0 }
 0x133   :  { %v435_v6 = vadd.f32 %v613_v4, %v483_v57  ;;  %v403_v7 = vadd.f32 %v482_v56, %v193_v5  ;;  %v338_v8 = vpop.f32.mrb[3].mxu1 }
 0x134   :  { %412 = vst [vmem:[#allocation10 + $0x18] sm:$0xff] %v404_v3  ;;  %v434_v9 = vadd.f32 %v483_v57, %v338_v8 }
 0x135   :  { %443 = vst [vmem:[#allocation11 + $0x18] sm:$0xff] %v435_v6  ;;  %411 = vst [vmem:[#allocation10 + $0x10] sm:$0xff] %v403_v7  ;;  %v572_v10 = vpop.f32.mrb[4].mxu0 }
 0x136   :  { %442 = vst [vmem:[#allocation11 + $0x10] sm:$0xff] %v434_v9  ;;  %v406_v11 = vadd.f32 %v572_v10, %v482_v56  ;;  %v616_v12 = vpop.f32.mrb[4].mxu1  ;;  %v203_v13 = vpop.f32.mrb[5].mxu0 }
 0x137   :  { %v437_v14 = vadd.f32 %v616_v12, %v483_v57  ;;  %v405_v15 = vadd.f32 %v482_v56, %v203_v13  ;;  %v348_v16 = vpop.f32.mrb[5].mxu1 }
 0x138   :  { %414 = vst [vmem:[#allocation10 + $0x28] sm:$0xff] %v406_v11  ;;  %v436_v17 = vadd.f32 %v483_v57, %v348_v16 }
 0x139   :  { %445 = vst [vmem:[#allocation11 + $0x28] sm:$0xff] %v437_v14  ;;  %413 = vst [vmem:[#allocation10 + $0x20] sm:$0xff] %v405_v15  ;;  %v575_v18 = vpop.f32.mrb[6].mxu0 }
 0x13a   :  { %444 = vst [vmem:[#allocation11 + $0x20] sm:$0xff] %v436_v17  ;;  %v408_v19 = vadd.f32 %v575_v18, %v482_v56  ;;  %v619_v20 = vpop.f32.mrb[6].mxu1  ;;  %v213_v21 = vpop.f32.mrb[7].mxu0 }
 0x13b   :  { %v439_v22 = vadd.f32 %v619_v20, %v483_v57  ;;  %v407_v23 = vadd.f32 %v482_v56, %v213_v21  ;;  %v358_v24 = vpop.f32.mrb[7].mxu1 }
 0x13c   :  { %416 = vst [vmem:[#allocation10 + $0x38] sm:$0xff] %v408_v19  ;;  %v438_v25 = vadd.f32 %v483_v57, %v358_v24 }
 0x13d   :  { %447 = vst [vmem:[#allocation11 + $0x38] sm:$0xff] %v439_v22  ;;  %415 = vst [vmem:[#allocation10 + $0x30] sm:$0xff] %v407_v23 }
 0x13e   :  { %446 = vst [vmem:[#allocation11 + $0x30] sm:$0xff] %v438_v25 }
 0x13f   :  { %768 = shalt.err (!%p765_p0)
}
 0x140   :  { %s769_s19 = scalar_lea.hbm %s951_s5, 1024 }
 0x141   :  { %p770_p1 = scmp.ne.s32.totalorder %s951_s5, %s769_s19  ;;  %p773_p2 = scmp.lt.u32.totalorder %s769_s19, %s951_s5 }
 0x143   :  { %p775_p3 = pnand %p773_p2, %p770_p1 }
 0x145   :  { %778 = shalt.err (!%p775_p3)
}
 0x146   :  { %459 = dma.vmem_to_hbm [thread:$0]  %s454_s4, 1024, %s951_s5, [#allocation6], %s811_s9, %s811_s9, %s812_s10  }
 0x147   :  { %s779_s26 = scalar_lea.vmem %s909_s15, 1024  ;;  %p784_p5 = scmp.lt.s32.totalorder %s909_s15, %s909_s15 }
 0x148   :  { %p780_p4 = scmp.ne.s32.totalorder %s909_s15, %s779_s26  ;;  %p785_p6 = scmp.lt.s32.totalorder %s779_s26, %s779_s26 }
 0x14a   :  { %p786_p7 = por %p785_p6, %p784_p5 }
 0x14c   :  { %p787_p8 = pnand %p786_p7, %p780_p4 }
 0x14e   :  { %790 = shalt.err (!%p787_p8)
}
 0x14f   :  { %s791_s29 = scalar_lea.hbm %s952_s6, 1024 }
 0x150   :  { %p792_p9 = scmp.ne.s32.totalorder %s952_s6, %s791_s29  ;;  %p795_p10 = scmp.lt.u32.totalorder %s791_s29, %s952_s6 }
 0x152   :  { %p797_p11 = pnand %p795_p10, %p792_p9 }
 0x154   :  { %800 = shalt.err (!%p797_p11)
}
 0x155   :  { %471 = dma.vmem_to_hbm [thread:$0]  %s909_s15, 1024, %s952_s6, [#allocation12], %s811_s9, %s811_s9, %s812_s10  }
 0x156   :  { %805 = dma.done.wait [#allocation6], 1024  }
 0x157   :  { %806 = vsyncadd [#allocation6], 4294966272 }
 0x158   :  { %807 = dma.done.wait [#allocation12], 1024  }
 0x159   :  { %808 = vsyncadd [#allocation12], 4294966272 }
 0x15a   :  { %478 = vsyncpa [#allocation5], 1 }
 0x15b   :  { %479 = vsyncpa [#allocation8], 1 }
 0x15c   :  { %480 = vsyncpa [#allocation6], 1 }
 0x15d   :  { %481 = vsyncpa [#allocation12], 1 }

</bundles_post_ra>
